<compile_context>
chip_gen: v6e
topology: v6e:2x2x1
jax: 0.10.0
libtpu: 0.0.40
codegen_flags: <defaults>
</compile_context>

<pallas_src>
from functools import partial

import jax
import jax.numpy as jnp
from jax import lax
from jax.experimental import pallas as pl
from jax.experimental.pallas import tpu as pltpu

_LANES = 128
_SUBLANES = 8
# Per-input, per-block VMEM byte target.  Two inputs x two pipeline buffers
# => <= 16 MiB of input buffers, comfortably inside the explicit 32 MiB
# scoped-VMEM limit below on v5e / v6e / v7x.
_BLOCK_BYTES = 4 * 1024 * 1024
_VMEM_LIMIT = 32 * 1024 * 1024


def _round_up(x, m):
    return ((x + m - 1) // m) * m


def _mae_kernel_fullrow(x_ref, y_ref, o_ref, *, scale):
    # x_ref / y_ref: (TB, K) — the whole flattened row per batch tile.
    diff = jnp.abs(x_ref[...].astype(jnp.float32) - y_ref[...].astype(jnp.float32))
    o_ref[...] = jnp.sum(diff, axis=-1, keepdims=True) * scale


def _mae_kernel_tiled(x_ref, y_ref, o_ref, acc_ref, *, scale, k_valid, mask_tail):
    # x_ref / y_ref: (TB, TK) tile; acc_ref: (TB, 128) f32 lane-dense
    # accumulator resident across the K grid axis; o_ref: (TB, 1).
    k = pl.program_id(1)

    @pl.when(k == 0)
    def _():
        acc_ref[...] = jnp.zeros_like(acc_ref)

    diff = jnp.abs(x_ref[...].astype(jnp.float32) - y_ref[...].astype(jnp.float32))
    tb, tk = diff.shape

    if mask_tail:
        # Zero out-of-range columns of the (partial) last K block.
        col = k * tk + lax.broadcasted_iota(jnp.int32, (tb, tk), 1)
        diff = jnp.where(col < k_valid, diff, 0.0)

    # Lane-dense accumulation: fold TK columns into 128 lanes with plain VALU
    # adds; the cross-lane (XLU) reduction happens once, at the last K step.
    acc = acc_ref[...]
    for j in range(tk // _LANES):
        acc = acc + diff[:, j * _LANES:(j + 1) * _LANES]
    acc_ref[...] = acc

    @pl.when(k == pl.num_programs(1) - 1)
    def _():
        o_ref[...] = jnp.sum(acc_ref[...], axis=-1, keepdims=True) * scale


def mae(x_dict, y, *, tb=256, block_bytes=_BLOCK_BYTES):
    """Pallas implementation of the MAE module's forward pass."""
    x = x_dict['x']
    y = jnp.asarray(y)                       # keep y's own dtype; upcast in-kernel
    B, N, A = x.shape
    K = N * A
    out_dtype = jnp.promote_types(x.dtype, y.dtype)

    xf = x.reshape(B, K)
    yf = y.reshape(B, K)

    x_bytes = jnp.dtype(xf.dtype).itemsize
    y_bytes = jnp.dtype(yf.dtype).itemsize
    itemsize = max(x_bytes, y_bytes)
    scale = 1.0 / float(K)

    # Batch tile: multiple of 8 (or the full batch when B <= 8 so the block
    # dim equals the array dim), and at least two tiles when B > 8 so the
    # "parallel" batch axis can be sharded across v7x's two TensorCores.
    if B <= _SUBLANES:
        TB = B
    else:
        TB = min(tb, max(_SUBLANES, _round_up(pl.cdiv(B, 2), _SUBLANES)))
    nb = pl.cdiv(B, TB)

    cost = pl.CostEstimate(
        flops=3 * B * K,
        transcendentals=0,
        bytes_accessed=B * K * (x_bytes + y_bytes) + B * 4,
    )

    if TB * K * itemsize <= block_bytes:
        # Single pass over the whole flattened row: fully contiguous DMAs,
        # no K grid axis, no accumulator, no masking (block dim == array dim).
        out = pl.pallas_call(
            partial(_mae_kernel_fullrow, scale=scale),
            out_shape=jax.ShapeDtypeStruct((B, 1), jnp.float32),
            grid_spec=pltpu.PrefetchScalarGridSpec(
                num_scalar_prefetch=0,
                grid=(nb,),
                in_specs=[
                    pl.BlockSpec((TB, K), lambda i: (i, 0)),
                    pl.BlockSpec((TB, K), lambda i: (i, 0)),
                ],
                out_specs=pl.BlockSpec((TB, 1), lambda i: (i, 0)),
            ),
            compiler_params=pltpu.CompilerParams(
                dimension_semantics=("parallel",),
                vmem_limit_bytes=_VMEM_LIMIT,
            ),
            cost_estimate=cost,
        )(xf, yf)
    else:
        # Tiled reduction over K (lane-dense, 128-multiple tiles), tail masked
        # in-kernel; no padded copies of the inputs are ever materialized.
        TK = max(_LANES, (block_bytes // (TB * itemsize)) // _LANES * _LANES)
        nk = pl.cdiv(K, TK)
        out = pl.pallas_call(
            partial(_mae_kernel_tiled, scale=scale, k_valid=K,
                    mask_tail=(K % TK != 0)),
            out_shape=jax.ShapeDtypeStruct((B, 1), jnp.float32),
            grid_spec=pltpu.PrefetchScalarGridSpec(
                num_scalar_prefetch=0,
                grid=(nb, nk),
                in_specs=[
                    pl.BlockSpec((TB, TK), lambda i, k: (i, k)),
                    pl.BlockSpec((TB, TK), lambda i, k: (i, k)),
                ],
                # Output tile indexed per batch tile; written at the last K step.
                out_specs=pl.BlockSpec((TB, 1), lambda i, k: (i, 0)),
                scratch_shapes=[pltpu.VMEM((TB, _LANES), jnp.float32)],
            ),
            compiler_params=pltpu.CompilerParams(
                dimension_semantics=("parallel", "arbitrary"),
                vmem_limit_bytes=_VMEM_LIMIT,
            ),
            cost_estimate=cost,
        )(xf, yf)

    return out[:, 0].astype(out_dtype)


if __name__ == "__main__":
    key = jax.random.PRNGKey(0)
    kx, ky = jax.random.split(key)

    # Small shape consistent with the module: (batch, #points, #axes=[x, y]).
    B, N, A = 2, 8, 2
    x = jax.random.normal(kx, (B, N, A), dtype=jnp.float32)
    y = jax.random.normal(ky, (B, N, A), dtype=jnp.float32)

    result = jax.block_until_ready(mae({'x': x}, y))
    ref = jnp.abs(x - y).mean(-1).mean(-1)
    assert result.shape == (B,)
    assert jnp.allclose(result, ref, atol=1e-5, rtol=1e-5), (result, ref)

    # Also exercise the tiled / masked path with ragged shapes by forcing a
    # tiny per-block byte budget (ragged batch of 10, K=300 not a multiple of
    # 128 -> tail masking, multiple K steps, partial last batch block).
    kx2, ky2 = jax.random.split(ky)
    B2, N2, A2 = 10, 100, 3
    x2 = jax.random.normal(kx2, (B2, N2, A2), dtype=jnp.float32)
    y2 = jax.random.normal(ky2, (B2, N2, A2), dtype=jnp.float32)
    result2 = jax.block_until_ready(mae({'x': x2}, y2, block_bytes=4096))
    ref2 = jnp.abs(x2 - y2).mean(-1).mean(-1)
    assert result2.shape == (B2,)
    assert jnp.allclose(result2, ref2, atol=1e-5, rtol=1e-5), (result2, ref2)

    print("KERNEL_OK")
</pallas_src>

<mosaic_0001>
module attributes {stable_mosaic.version = 11 : i64} {
  func.func @_mae_kernel_fullrow(%arg0: i32, %arg1: memref<2x16xf32, #tpu.memory_space<vmem>>, %arg2: memref<2x16xf32, #tpu.memory_space<vmem>>, %arg3: memref<2x1xf32, #tpu.memory_space<vmem>>) attributes {dimension_semantics = [#tpu.dimension_semantics<parallel>], iteration_bounds = array<i64: 1>, scalar_prefetch = 0 : i64, scratch_operands = 0 : i64, tpu.core_type = #tpu.core_type<tc>, window_params = [{transform_indices = @transform_0, window_bounds = array<i64: 2, 16>}, {transform_indices = @transform_1, window_bounds = array<i64: 2, 16>}, {transform_indices = @transform_2, window_bounds = array<i64: 2, 1>}]} {
    %c0 = arith.constant 0 : index
    %c0_0 = arith.constant 0 : index
    %0 = vector.load %arg1[%c0, %c0_0] : memref<2x16xf32, #tpu.memory_space<vmem>>, vector<2x16xf32>
    %c0_1 = arith.constant 0 : index
    %c0_2 = arith.constant 0 : index
    %1 = vector.load %arg2[%c0_1, %c0_2] : memref<2x16xf32, #tpu.memory_space<vmem>>, vector<2x16xf32>
    %2 = arith.subf %0, %1 : vector<2x16xf32>
    %3 = math.absf %2 : vector<2x16xf32>
    %cst = arith.constant dense<0.000000e+00> : vector<2xf32>
    %4 = vector.multi_reduction <add>, %3, %cst [1] : vector<2x16xf32> to vector<2xf32>
    %5 = vector.shape_cast %4 : vector<2xf32> to vector<2x1xf32>
    %cst_3 = arith.constant 6.250000e-02 : f32
    %6 = vector.broadcast %cst_3 : f32 to vector<2x1xf32>
    %7 = arith.mulf %5, %6 : vector<2x1xf32>
    %c0_4 = arith.constant 0 : index
    %c0_5 = arith.constant 0 : index
    %8 = vector.load %arg3[%c0_4, %c0_5] : memref<2x1xf32, #tpu.memory_space<vmem>>, vector<2x1xf32>
    tpu.vector_store %arg3[%c0_4, %c0_5], %7 {strides = array<i32>} : memref<2x1xf32, #tpu.memory_space<vmem>>, vector<2x1xf32>,
    return
  }
  func.func @transform_0(%arg0: i32) -> (i32, i32) {
    %c0_i32 = arith.constant 0 : i32
    %c0_i32_0 = arith.constant 0 : i32
    return %arg0, %c0_i32 : i32, i32
  }
  func.func @transform_1(%arg0: i32) -> (i32, i32) {
    %c0_i32 = arith.constant 0 : i32
    %c0_i32_0 = arith.constant 0 : i32
    return %arg0, %c0_i32 : i32, i32
  }
  func.func @transform_2(%arg0: i32) -> (i32, i32) {
    %c0_i32 = arith.constant 0 : i32
    %c0_i32_0 = arith.constant 0 : i32
    return %arg0, %c0_i32 : i32, i32
  }
}

</mosaic_0001>

<bundles_post_ra>
// kernel: tpu_custom_call.1
= control target key start
LH: loop header
LB: loop body
LE: loop exit
PB: predicated region body
PF: predicated region fallthrough
CT: control target
= control target key end

     0   :  { %7 = vsyncpa [#allocation3], 0  ;;  %s124_s0 = inlined_call_operand.hbm [shape: f32[2,16], index: 0, kind: input, shape index: {}]   ;;  %s125_s1 = inlined_call_operand.hbm [shape: f32[2,16], index: 1, kind: input, shape index: {}]   ;;  %s126_s2 = inlined_call_operand.vmem [shape: f32[2,1], index: 2, kind: output, shape index: {}]  }
   0x1   :  { %8 = vsyncpa [#allocation5], 0  ;;  %s98_s9 = smov [#allocation2]   ;;  %s99_s11 = smov [#allocation4]  }
   0x2   :  { %s15_s10 = sshll.u32 %s98_s9, 4  ;;  %s25_s12 = sshll.u32 %s99_s11, 4  ;;  %s16_s10 = int_to_ptr.vmem [resolvable:$true] %s15_s10  ;;  %s26_s12 = int_to_ptr.vmem [resolvable:$true] %s25_s12 }
   0x3   :  { %s62_s13 = scalar_lea.vmem %s16_s10, 32  ;;  %p67_p1 = scmp.lt.s32.totalorder %s16_s10, %s16_s10 }
   0x4   :  { %p63_p0 = scmp.ne.s32.totalorder %s16_s10, %s62_s13  ;;  %p68_p2 = scmp.lt.s32.totalorder %s62_s13, %s62_s13 }
   0x6   :  { %p69_p3 = por %p68_p2, %p67_p1 }
   0x8   :  { %p70_p4 = pnand %p69_p3, %p63_p0 }
   0xa   :  { %73 = shalt.err (!%p70_p4)
}
   0xb   :  { %18 = dma.hbm_to_vmem [thread:$0]  %s124_s0, 32, %s16_s10, [#allocation3]  }
   0xc   :  { %s82_s16 = scalar_lea.vmem %s26_s12, 32  ;;  %p87_p6 = scmp.lt.s32.totalorder %s26_s12, %s26_s12 }
   0xd   :  { %p83_p5 = scmp.ne.s32.totalorder %s26_s12, %s82_s16  ;;  %p88_p7 = scmp.lt.s32.totalorder %s82_s16, %s82_s16 }
   0xf   :  { %p89_p8 = por %p88_p7, %p87_p6 }
  0x11   :  { %p90_p9 = pnand %p89_p8, %p83_p5 }
  0x13   :  { %93 = shalt.err (!%p90_p9)
}
  0x14   :  { %28 = dma.hbm_to_vmem [thread:$0]  %s125_s1, 32, %s26_s12, [#allocation5]  }
  0x15   :  { %94 = dma.done.wait [#allocation3], 32  }
  0x16   :  { %95 = vsyncadd [#allocation3], 4294967264 }
  0x17   :  { %96 = dma.done.wait [#allocation5], 32  }
  0x18   :  { %97 = vsyncadd [#allocation5], 4294967264  ;;  %v35_v0 = vld [vmem:[#allocation2] sm:$0x3]  ;;  %v36_v1 = vld [vmem:[#allocation4] sm:$0x3] }
  0x19   :  { %v37_v2 = vsub.f32 %v35_v0, %v36_v1  ;;  %vm39_vm0 = vcmask 123904   ;;  %vm44_vm1 = vcmask 1024  }
  0x1b   :  { %v38_v3 = vand.u32 2147483647, %v37_v2 }
  0x1d   :  { %v40_v4 = vsel %vm39_vm0, %v38_v3, 0.0 }
  0x1e   :  { %41 = vadd.xlane.f32.xlu0 %v40_v4 }
  0xa7   :  { %v42_v5 = vpop.xlane.xlu0 %41 }
  0xa8   :  { %v43_v6 = vmul.f32 0.0625, %v42_v5 }
  0xaa   :  { %45 = vst.msk [vmem:[%s126_s2] sm:$0x3] %vm44_vm1, %v43_v6 }
  0xab   :  { %50 = vsyncpa [#allocation3], 1 }
  0xac   :  { %51 = vsyncpa [#allocation5], 1 }

</bundles_post_ra>
